<compile_context>
chip_gen: v5e
topology: v5e:2x2
jax: 0.10.0
libtpu: 0.0.40
codegen_flags: <defaults>
</compile_context>

<pallas_src>
import functools

import jax
import jax.numpy as jnp
from jax.experimental import pallas as pl
from jax.experimental.pallas import tpu as pltpu

_LOG2 = 0.6931471805599453
_GROUP = 8  # atoms folded into the lane axis -> lane-dense loads/stores


def _round_up(v, m):
    return ((v + m - 1) // m) * m


def _ssp(x):
    # shifted softplus: log(0.5*exp(x) + 0.5) = softplus(x) - log(2), stable form.
    return jnp.maximum(x, 0.0) + jnp.log1p(jnp.exp(-jnp.abs(x))) - _LOG2


def _default_activation_dtype():
    # v6e / v7x have a bf16 EUP datapath -> bf16 halves the exp/log cost.
    # v5e (and older) have no bf16 VPU/EUP -> keep the activation in f32.
    try:
        kind = jax.devices()[0].device_kind.lower()
    except Exception:
        return jnp.float32
    if "v6" in kind or "v7" in kind or "7x" in kind:
        return jnp.bfloat16
    return jnp.float32


def _atomistic_kernel(x_ref, wr_ref, br_ref, wo_ref, bo_ref, o_ref, *, act_dtype):
    # All arrays are "group-folded": _GROUP consecutive atoms share one row, so
    # every VMEM load/store is lane-dense (last dims G*n_in / G*n_feat / G*n_out).
    #
    # x_ref : (TMG, G*n_in)        f32/bf16  atom features (bf16 cast done HERE,
    #                                        so x is read from HBM only once)
    # wr_ref: (G*n_in, G*n_feat)   bf16      block-diag representation weights
    # br_ref: (1, G*n_feat)        f32       representation bias (tiled)
    # wo_ref: (G*n_feat, G*n_out)  bf16      block-diag fused output-head weights
    # bo_ref: (1, G*n_out)         f32       fused output-head bias (tiled)
    # o_ref : (TMG, G*n_out)       f32/bf16  lane-dense output slab (unmasked vst)
    x = x_ref[...].astype(jnp.bfloat16)
    h = jnp.dot(x, wr_ref[...], preferred_element_type=jnp.float32)
    h = (h + br_ref[...]).astype(act_dtype)
    h = _ssp(h)  # EUP work: bf16 on v6e/v7x, f32 on v5e
    y = jnp.dot(h.astype(jnp.bfloat16), wo_ref[...],
                preferred_element_type=jnp.float32)
    o_ref[...] = (y + bo_ref[...]).astype(o_ref.dtype)


def atomistic_model_forward(x, rep_params, head_params, *, tile_m=4096,
                            out_dtype=jnp.float32, activation_dtype=None):
    """Fused AtomisticModel forward.

    x:           (batch, n_atoms, n_in)  float32 (or bfloat16)
    rep_params:  (w_rep (n_in, n_feat), b_rep (n_feat,))
    head_params: dict name -> (w (n_feat, n_out_i), b (n_out_i,))
    Returns dict name -> (batch, n_atoms, n_out_i) (or a single array if there
    is only one head), mirroring AtomisticModel's dict-vs-single behaviour.
    """
    batch, n_atoms, n_in = x.shape
    w_rep, b_rep = rep_params
    n_feat = int(w_rep.shape[1])

    names = list(head_params.keys())
    n_outs = [int(head_params[k][0].shape[1]) for k in names]
    w_heads = jnp.concatenate([head_params[k][0] for k in names], axis=1)
    b_heads = jnp.concatenate([head_params[k][1] for k in names], axis=0)
    n_out_total = int(w_heads.shape[1])

    if activation_dtype is None:
        activation_dtype = _default_activation_dtype()

    g = _GROUP
    m = batch * n_atoms
    m_pad = _round_up(m, g)
    x_flat = x.reshape(m, n_in)
    if m_pad != m:
        # Only hit when batch*n_atoms % 8 != 0 (one extra copy of x; <=7 rows added).
        x_flat = jnp.pad(x_flat, ((0, m_pad - m), (0, 0)))
    mg = m_pad // g
    x_grp = x_flat.reshape(mg, g * n_in)  # contiguous row-major re-view (no copy)

    # Grouped-row tile: big enough to amortize the ~0.35 us per-grid-step
    # overhead, capped so the grid keeps >=2 steps when possible (v7x dual TC)
    # and stays sublane-aligned (multiple of 8, or the full extent).
    tmg = max(1, int(tile_m) // g)
    tmg = min(tmg, _round_up(pl.cdiv(mg, 2), 8))
    tmg = max(8, _round_up(tmg, 8))
    if tmg >= mg:
        tmg = mg
    grid = pl.cdiv(mg, tmg)

    # Block-diagonal ("group-folded") weights: kron(eye(G), W).  8x more MXU
    # work, but the MXU is idle at these widths and this keeps every load/store
    # lane-dense with zero in-kernel relayout.
    eye_g = jnp.eye(g, dtype=jnp.float32)
    wr_blk = jnp.kron(eye_g, w_rep.astype(jnp.float32)).astype(jnp.bfloat16)
    wo_blk = jnp.kron(eye_g, w_heads.astype(jnp.float32)).astype(jnp.bfloat16)
    br_blk = jnp.tile(b_rep.astype(jnp.float32), g).reshape(1, g * n_feat)
    bo_blk = jnp.tile(b_heads.astype(jnp.float32), g).reshape(1, g * n_out_total)

    kernel = functools.partial(_atomistic_kernel, act_dtype=activation_dtype)

    out_grp = pl.pallas_call(
        kernel,
        out_shape=jax.ShapeDtypeStruct((mg, g * n_out_total), out_dtype),
        grid_spec=pl.GridSpec(
            grid=(grid,),
            in_specs=[
                pl.BlockSpec((tmg, g * n_in), lambda i: (i, 0)),            # x tile
                pl.BlockSpec((g * n_in, g * n_feat), lambda i: (0, 0)),     # w_rep (resident)
                pl.BlockSpec((1, g * n_feat), lambda i: (0, 0)),            # b_rep
                pl.BlockSpec((g * n_feat, g * n_out_total), lambda i: (0, 0)),  # w_heads
                pl.BlockSpec((1, g * n_out_total), lambda i: (0, 0)),       # b_heads
            ],
            out_specs=pl.BlockSpec((tmg, g * n_out_total), lambda i: (i, 0)),
        ),
        compiler_params=pltpu.CompilerParams(
            dimension_semantics=("parallel",),  # megacore sharding on v7x
        ),
    )(x_grp, wr_blk, br_blk, wo_blk, bo_blk)

    out_flat = out_grp.reshape(m_pad, n_out_total)  # contiguous re-view
    if m_pad != m:
        out_flat = out_flat[:m]

    outs = {}
    off = 0
    for name, n_o in zip(names, n_outs):
        outs[name] = out_flat[:, off:off + n_o].reshape(batch, n_atoms, n_o)
        off += n_o
    if len(names) == 1:
        return outs[names[0]]
    return outs


def _reference(x, rep_params, head_params, act_dtype):
    """Pure-JAX reference mirroring the kernel's bf16-input / f32-accum math."""
    batch, n_atoms, n_in = x.shape
    w_rep, b_rep = rep_params
    names = list(head_params.keys())
    w_heads = jnp.concatenate([head_params[k][0] for k in names], axis=1)
    b_heads = jnp.concatenate([head_params[k][1] for k in names], axis=0)

    xb = x.reshape(-1, n_in).astype(jnp.bfloat16)
    h = jnp.dot(xb, w_rep.astype(jnp.bfloat16),
                preferred_element_type=jnp.float32) + b_rep.reshape(1, -1)
    h = _ssp(h.astype(act_dtype))
    y = jnp.dot(h.astype(jnp.bfloat16), w_heads.astype(jnp.bfloat16),
                preferred_element_type=jnp.float32) + b_heads.reshape(1, -1)

    outs = {}
    off = 0
    for name in names:
        n_o = head_params[name][0].shape[1]
        outs[name] = y[:, off:off + n_o].reshape(batch, n_atoms, n_o)
        off += n_o
    return outs


if __name__ == "__main__":
    # Small shapes consistent with the module: batch=2 molecules, 8 atoms each,
    # n_in=32 input features, n_feat=64 representation features, two output
    # modules with 8 targets each (fused into a 16-wide head inside the kernel).
    batch, n_atoms, n_in, n_feat = 2, 8, 32, 64
    head_sizes = {"energy_contrib": 8, "charges": 8}

    key = jax.random.PRNGKey(0)
    kx, kwr, kbr, kw1, kb1, kw2, kb2 = jax.random.split(key, 7)
    x = jax.random.normal(kx, (batch, n_atoms, n_in), dtype=jnp.float32)

    rep_params = (
        jax.random.normal(kwr, (n_in, n_feat), dtype=jnp.float32) * 0.1,
        jax.random.normal(kbr, (n_feat,), dtype=jnp.float32) * 0.01,
    )
    head_params = {
        "energy_contrib": (
            jax.random.normal(kw1, (n_feat, head_sizes["energy_contrib"]),
                              dtype=jnp.float32) * 0.1,
            jax.random.normal(kb1, (head_sizes["energy_contrib"],),
                              dtype=jnp.float32) * 0.01,
        ),
        "charges": (
            jax.random.normal(kw2, (n_feat, head_sizes["charges"]),
                              dtype=jnp.float32) * 0.1,
            jax.random.normal(kb2, (head_sizes["charges"],),
                              dtype=jnp.float32) * 0.01,
        ),
    }

    act_dtype = _default_activation_dtype()
    outs = atomistic_model_forward(x, rep_params, head_params,
                                   activation_dtype=act_dtype)
    outs = jax.block_until_ready(outs)

    refs = _reference(x, rep_params, head_params, act_dtype)
    for name in head_params:
        assert outs[name].shape == (batch, n_atoms, head_sizes[name])
        assert jnp.allclose(outs[name], refs[name], atol=1e-2, rtol=1e-2), name

    print("KERNEL_OK")
</pallas_src>

<mosaic_0001>
module attributes {stable_mosaic.version = 11 : i64} {
  func.func @_atomistic_kernel(%arg0: i32, %arg1: memref<2x256xf32, #tpu.memory_space<vmem>>, %arg2: memref<256x512xbf16, #tpu.memory_space<vmem>>, %arg3: memref<1x512xf32, #tpu.memory_space<vmem>>, %arg4: memref<512x128xbf16, #tpu.memory_space<vmem>>, %arg5: memref<1x128xf32, #tpu.memory_space<vmem>>, %arg6: memref<2x128xf32, #tpu.memory_space<vmem>>) attributes {dimension_semantics = [#tpu.dimension_semantics<parallel>], iteration_bounds = array<i64: 1>, scalar_prefetch = 0 : i64, scratch_operands = 0 : i64, tpu.core_type = #tpu.core_type<tc>, window_params = [{transform_indices = @transform_0, window_bounds = array<i64: 2, 256>}, {pipeline_mode = #tpu.pipeline_mode<synchronous>, transform_indices = @transform_1, window_bounds = array<i64: 256, 512>}, {pipeline_mode = #tpu.pipeline_mode<synchronous>, transform_indices = @transform_2, window_bounds = array<i64: 1, 512>}, {pipeline_mode = #tpu.pipeline_mode<synchronous>, transform_indices = @transform_3, window_bounds = array<i64: 512, 128>}, {pipeline_mode = #tpu.pipeline_mode<synchronous>, transform_indices = @transform_4, window_bounds = array<i64: 1, 128>}, {transform_indices = @transform_5, window_bounds = array<i64: 2, 128>}]} {
    %c0 = arith.constant 0 : index
    %c0_0 = arith.constant 0 : index
    %0 = vector.load %arg1[%c0, %c0_0] : memref<2x256xf32, #tpu.memory_space<vmem>>, vector<2x256xf32>
    %1 = arith.truncf %0 : vector<2x256xf32> to vector<2x256xbf16>
    %c0_1 = arith.constant 0 : index
    %c0_2 = arith.constant 0 : index
    %2 = vector.load %arg2[%c0_1, %c0_2] : memref<256x512xbf16, #tpu.memory_space<vmem>>, vector<256x512xbf16>
    %cst = arith.constant dense<0.000000e+00> : vector<2x512xf32>
    %3 = tpu.matmul %1, %2, %cst {dimension_numbers = #tpu.dot_dimension_numbers<[1], [0], [0], [1], [0, 0, 1, 1], [], []>} : vector<2x256xbf16>, vector<256x512xbf16>, vector<2x512xf32> -> vector<2x512xf32>
    %c0_3 = arith.constant 0 : index
    %c0_4 = arith.constant 0 : index
    %4 = vector.load %arg3[%c0_3, %c0_4] : memref<1x512xf32, #tpu.memory_space<vmem>>, vector<1x512xf32>
    %5 = vector.broadcast %4 : vector<1x512xf32> to vector<2x512xf32>
    %6 = arith.addf %3, %5 : vector<2x512xf32>
    %cst_5 = arith.constant 0.000000e+00 : f32
    %7 = vector.broadcast %cst_5 : f32 to vector<2x512xf32>
    %8 = arith.maximumf %6, %7 : vector<2x512xf32>
    %9 = math.absf %6 : vector<2x512xf32>
    %cst_6 = arith.constant 0.000000e+00 : f32
    %10 = vector.broadcast %cst_6 : f32 to vector<2x512xf32>
    %11 = arith.subf %10, %9 : vector<2x512xf32>
    %12 = math.exp %11 : vector<2x512xf32>
    %13 = math.log1p %12 : vector<2x512xf32>
    %14 = arith.addf %8, %13 : vector<2x512xf32>
    %cst_7 = arith.constant 0.693147182 : f32
    %15 = vector.broadcast %cst_7 : f32 to vector<2x512xf32>
    %16 = arith.subf %14, %15 : vector<2x512xf32>
    %17 = arith.truncf %16 : vector<2x512xf32> to vector<2x512xbf16>
    %c0_8 = arith.constant 0 : index
    %c0_9 = arith.constant 0 : index
    %18 = vector.load %arg4[%c0_8, %c0_9] : memref<512x128xbf16, #tpu.memory_space<vmem>>, vector<512x128xbf16>
    %cst_10 = arith.constant dense<0.000000e+00> : vector<2x128xf32>
    %19 = tpu.matmul %17, %18, %cst_10 {dimension_numbers = #tpu.dot_dimension_numbers<[1], [0], [0], [1], [0, 0, 1, 1], [], []>} : vector<2x512xbf16>, vector<512x128xbf16>, vector<2x128xf32> -> vector<2x128xf32>
    %c0_11 = arith.constant 0 : index
    %c0_12 = arith.constant 0 : index
    %20 = vector.load %arg5[%c0_11, %c0_12] : memref<1x128xf32, #tpu.memory_space<vmem>>, vector<1x128xf32>
    %21 = vector.broadcast %20 : vector<1x128xf32> to vector<2x128xf32>
    %22 = arith.addf %19, %21 : vector<2x128xf32>
    %c0_13 = arith.constant 0 : index
    %c0_14 = arith.constant 0 : index
    %23 = vector.load %arg6[%c0_13, %c0_14] : memref<2x128xf32, #tpu.memory_space<vmem>>, vector<2x128xf32>
    tpu.vector_store %arg6[%c0_13, %c0_14], %22 {strides = array<i32>} : memref<2x128xf32, #tpu.memory_space<vmem>>, vector<2x128xf32>,
    return
  }
  func.func @transform_0(%arg0: i32) -> (i32, i32) {
    %c0_i32 = arith.constant 0 : i32
    %c0_i32_0 = arith.constant 0 : i32
    return %arg0, %c0_i32 : i32, i32
  }
  func.func @transform_1(%arg0: i32) -> (i32, i32) {
    %c0_i32 = arith.constant 0 : i32
    %c0_i32_0 = arith.constant 0 : i32
    %c0_i32_1 = arith.constant 0 : i32
    return %c0_i32, %c0_i32_0 : i32, i32
  }
  func.func @transform_2(%arg0: i32) -> (i32, i32) {
    %c0_i32 = arith.constant 0 : i32
    %c0_i32_0 = arith.constant 0 : i32
    %c0_i32_1 = arith.constant 0 : i32
    return %c0_i32, %c0_i32_0 : i32, i32
  }
  func.func @transform_3(%arg0: i32) -> (i32, i32) {
    %c0_i32 = arith.constant 0 : i32
    %c0_i32_0 = arith.constant 0 : i32
    %c0_i32_1 = arith.constant 0 : i32
    return %c0_i32, %c0_i32_0 : i32, i32
  }
  func.func @transform_4(%arg0: i32) -> (i32, i32) {
    %c0_i32 = arith.constant 0 : i32
    %c0_i32_0 = arith.constant 0 : i32
    %c0_i32_1 = arith.constant 0 : i32
    return %c0_i32, %c0_i32_0 : i32, i32
  }
  func.func @transform_5(%arg0: i32) -> (i32, i32) {
    %c0_i32 = arith.constant 0 : i32
    %c0_i32_0 = arith.constant 0 : i32
    return %arg0, %c0_i32 : i32, i32
  }
}

</mosaic_0001>

<bundles_post_ra>
// kernel: tpu_custom_call.1
= control target key start
LH: loop header
LB: loop body
LE: loop exit
PB: predicated region body
PF: predicated region fallthrough
CT: control target
= control target key end

     0   :  { %10 = vsyncpa [#allocation3], 0  ;;  %s1708_s0 = inlined_call_operand.hbm [shape: f32[2,256], index: 0, kind: input, shape index: {}]   ;;  %s1709_s1 = inlined_call_operand.hbm [shape: bf16[256,512], index: 1, kind: input, shape index: {}]   ;;  %s1710_s2 = inlined_call_operand.hbm [shape: f32[1,512], index: 2, kind: input, shape index: {}]   ;;  %s1711_s3 = inlined_call_operand.hbm [shape: bf16[512,128], index: 3, kind: input, shape index: {}]   ;;  %s1712_s4 = inlined_call_operand.vmem [shape: f32[1,128], index: 4, kind: input, shape index: {}]   ;;  %s1713_s5 = inlined_call_operand.hbm [shape: f32[2,128], index: 5, kind: output, shape index: {}]  }
   0x1   :  { %11 = vsyncpa [#allocation6], 0 }
   0x2   :  { %12 = vsyncpa [#allocation9], 0  ;;  %s29_s20 = sshll.u32 %s1709_s1, 4  ;;  %s30_s20 = int_to_ptr.hbm [resolvable:$true] %s29_s20 }
   0x3   :  { %13 = vsyncpa [#allocation4], 0  ;;  %s1625_s21 = smov [#allocation5]   ;;  %s19_s25 = sshll.u32 %s1708_s0, 4  ;;  %s20_s25 = int_to_ptr.hbm [resolvable:$true] %s19_s25 }
   0x4   :  { %s31_s22 = sshll.u32 %s1625_s21, 4  ;;  %s1626_s26 = smov 256   ;;  %s32_s22 = int_to_ptr.vmem [resolvable:$true] %s31_s22 }
   0x5   :  { %s1627_s27 = smov 16   ;;  %s1628_s28 = smov [#allocation2]  }
   0x6   :  { %37 = dma.hbm_to_vmem [thread:$0]  %s30_s20, 8192, %s32_s22, [#allocation6], %s1626_s26, %s1626_s26, %s1627_s27  }
   0x7   :  { %s21_s29 = sshll.u32 %s1628_s28, 4  ;;  %s43_s7 = sshll.u32 %s1710_s2, 4  ;;  %s22_s29 = int_to_ptr.vmem [resolvable:$true] %s21_s29  ;;  %s44_s7 = int_to_ptr.hbm [resolvable:$true] %s43_s7 }
   0x8   :  { %24 = dma.hbm_to_vmem [thread:$0]  %s20_s25, 64, %s22_s29, [#allocation3]  }
   0x9   :  { %s53_s9 = sshll.u32 %s1711_s3, 4  ;;  %s1629_s10 = smov [#allocation7]   ;;  %s54_s9 = int_to_ptr.hbm [resolvable:$true] %s53_s9 }
   0xa   :  { %s45_s11 = sshll.u32 %s1629_s10, 4  ;;  %s1630_s0 = smov [#allocation8]   ;;  %s46_s11 = int_to_ptr.vmem [resolvable:$true] %s45_s11 }
   0xb   :  { %48 = dma.hbm_to_vmem [thread:$0]  %s44_s7, 64, %s46_s11, [#allocation6]  }
   0xc   :  { %s55_s12 = sshll.u32 %s1630_s0, 4  ;;  %s1631_s13 = smov 64   ;;  %s56_s12 = int_to_ptr.vmem [resolvable:$true] %s55_s12 }
   0xd   :  { %s1632_s14 = smov 4  }
   0xe   :  { %61 = dma.hbm_to_vmem [thread:$0]  %s54_s9, 4096, %s56_s12, [#allocation9], %s1631_s13, %s1631_s13, %s1632_s14  }
   0xf   :  { %1617 = dma.done.wait [#allocation3], 64  }
  0x10   :  { %1618 = vsyncadd [#allocation3], 4294967232 }
  0x11   :  { %1619 = dma.done.wait [#allocation6], 8256  }
  0x12   :  { %1620 = vsyncadd [#allocation6], 4294959040 }
  0x13   :  { %1621 = dma.done.wait [#allocation9], 4096  }
  0x14   :  { %1622 = vsyncadd [#allocation9], 4294963200  ;;  %v1101_v0 = vld [vmem:[#allocation5 + $0xe0] sm:$0xf]  ;;  %v1405_v1 = vld [vmem:[#allocation5 + $0xec] sm:$0xf0] }
  0x15   :  { %v1229_v2 = vld [vmem:[#allocation5 + $0x1e0] sm:$0xf]  ;;  %v1102_v3 = vor.u32 %v1405_v1, %v1101_v0  ;;  %v1437_v4 = vld [vmem:[#allocation5 + $0x1ec] sm:$0xf0]  ;;  %v1403_v5 = vld [vmem:[#allocation5 + $0xe4] sm:$0xf] }
  0x16   :  { %v1103_v6 = vld [vmem:[#allocation5 + $0xf0] sm:$0xf0]  ;;  %v1230_v7 = vor.u32 %v1437_v4, %v1229_v2  ;;  %v1435_v9 = vld [vmem:[#allocation5 + $0x1e4] sm:$0xf]  ;;  %v1085_v11 = vld [vmem:[#allocation5 + $0xc0] sm:$0xf] }
  0x17   :  { %v1106_v8 = vor.u32 %v1403_v5, %v1103_v6  ;;  %v1231_v10 = vld [vmem:[#allocation5 + $0x1f0] sm:$0xf0]  ;;  %483 = vmatpush.bf16.msra.mxu0 %v1102_v3  ;;  %v1401_v13 = vld [vmem:[#allocation5 + $0xcc] sm:$0xf0]  ;;  %v1213_v14 = vld [vmem:[#allocation5 + $0x1c0] sm:$0xf] }
  0x18   :  { %v1234_v12 = vor.u32 %v1435_v9, %v1231_v10  ;;  %v1433_v15 = vld [vmem:[#allocation5 + $0x1cc] sm:$0xf0]  ;;  %496 = vmatpush.bf16.msra.mxu1 %v1230_v7  ;;  %v1086_v16 = vor.u32 %v1401_v13, %v1085_v11  ;;  %v1399_v18 = vld [vmem:[#allocation5 + $0xc4] sm:$0xf]  ;;  %v1087_v19 = vld [vmem:[#allocation5 + $0xd0] sm:$0xf0] }
  0x19   :  { %509 = vmatpush.bf16.msra.mxu2 %v1106_v8  ;;  %v1214_v17 = vor.u32 %v1433_v15, %v1213_v14  ;;  %v1431_v20 = vld [vmem:[#allocation5 + $0x1c4] sm:$0xf]  ;;  %v1090_v21 = vor.u32 %v1399_v18, %v1087_v19  ;;  %v1215_v22 = vld [vmem:[#allocation5 + $0x1d0] sm:$0xf0]  ;;  %v1069_v23 = vld [vmem:[#allocation5 + $0xa0] sm:$0xf] }
  0x1a   :  { %522 = vmatpush.bf16.msra.mxu3 %v1234_v12  ;;  %v1397_v24 = vld [vmem:[#allocation5 + $0xac] sm:$0xf0]  ;;  %v1218_v25 = vor.u32 %v1431_v20, %v1215_v22  ;;  %v1197_v26 = vld [vmem:[#allocation5 + $0x1a0] sm:$0xf]  ;;  %v1395_v28 = vld [vmem:[#allocation5 + $0xa4] sm:$0xf] }
  0x1b   :  { %v1429_v27 = vld [vmem:[#allocation5 + $0x1ac] sm:$0xf0]  ;;  %484 = vmatpush.bf16.msra.mxu0 %v1086_v16  ;;  %v1070_v29 = vor.u32 %v1397_v24, %v1069_v23  ;;  %v1071_v30 = vld [vmem:[#allocation5 + $0xb0] sm:$0xf0]  ;;  %v1427_v31 = vld [vmem:[#allocation5 + $0x1a4] sm:$0xf] }
  0x1c   :  { %v1199_v32 = vld [vmem:[#allocation5 + $0x1b0] sm:$0xf0]  ;;  %497 = vmatpush.bf16.msra.mxu1 %v1214_v17  ;;  %v1198_v33 = vor.u32 %v1429_v27, %v1197_v26  ;;  %v1074_v34 = vor.u32 %v1395_v28, %v1071_v30  ;;  %v1053_v35 = vld [vmem:[#allocation5 + $0x80] sm:$0xf]  ;;  %v1393_v36 = vld [vmem:[#allocation5 + $0x8c] sm:$0xf0] }
  0x1d   :  { %510 = vmatpush.bf16.msra.mxu2 %v1090_v21  ;;  %v1181_v37 = vld [vmem:[#allocation5 + $0x180] sm:$0xf]  ;;  %v1202_v38 = vor.u32 %v1427_v31, %v1199_v32  ;;  %v1425_v39 = vld [vmem:[#allocation5 + $0x18c] sm:$0xf0]  ;;  %v1391_v40 = vld [vmem:[#allocation5 + $0x84] sm:$0xf]  ;;  %v1054_v44 = vor.u32 %v1393_v36, %v1053_v35 }
  0x1e   :  { %523 = vmatpush.bf16.msra.mxu3 %v1218_v25  ;;  %v1055_v41 = vld [vmem:[#allocation5 + $0x90] sm:$0xf0]  ;;  %v1423_v42 = vld [vmem:[#allocation5 + $0x184] sm:$0xf]  ;;  %v1182_v45 = vor.u32 %v1425_v39, %v1181_v37  ;;  %v1037_v47 = vld [vmem:[#allocation5 + $0x60] sm:$0xf] }
  0x1f   :  { %v1183_v43 = vld [vmem:[#allocation5 + $0x190] sm:$0xf0]  ;;  %485 = vmatpush.bf16.msra.mxu0 %v1070_v29  ;;  %v1058_v46 = vor.u32 %v1391_v40, %v1055_v41  ;;  %v1389_v48 = vld [vmem:[#allocation5 + $0x6c] sm:$0xf0]  ;;  %v1165_v49 = vld [vmem:[#allocation5 + $0x160] sm:$0xf] }
  0x20   :  { %498 = vmatpush.bf16.msra.mxu1 %v1198_v33  ;;  %v1186_v50 = vor.u32 %v1423_v42, %v1183_v43  ;;  %v1421_v51 = vld [vmem:[#allocation5 + $0x16c] sm:$0xf0]  ;;  %v1387_v52 = vld [vmem:[#allocation5 + $0x64] sm:$0xf]  ;;  %v1039_v53 = vld [vmem:[#allocation5 + $0x70] sm:$0xf0]  ;;  %v1038_v56 = vor.u32 %v1389_v48, %v1037_v47 }
  0x21   :  { %511 = vmatpush.bf16.msra.mxu2 %v1074_v34  ;;  %v1419_v54 = vld [vmem:[#allocation5 + $0x164] sm:$0xf]  ;;  %v1167_v55 = vld [vmem:[#allocation5 + $0x170] sm:$0xf0]  ;;  %v1166_v57 = vor.u32 %v1421_v51, %v1165_v49  ;;  %v1042_v58 = vor.u32 %v1387_v52, %v1039_v53  ;;  %v1021_v59 = vld [vmem:[#allocation5 + $0x40] sm:$0xf] }
  0x22   :  { %524 = vmatpush.bf16.msra.mxu3 %v1202_v38  ;;  %v1385_v60 = vld [vmem:[#allocation5 + $0x4c] sm:$0xf0]  ;;  %v1149_v61 = vld [vmem:[#allocation5 + $0x140] sm:$0xf]  ;;  %v1170_v62 = vor.u32 %v1419_v54, %v1167_v55  ;;  %v1383_v0 = vld [vmem:[#allocation5 + $0x44] sm:$0xf] }
  0x23   :  { %486 = vmatpush.bf16.msra.mxu0 %v1054_v44  ;;  %v1417_v63 = vld [vmem:[#allocation5 + $0x14c] sm:$0xf0]  ;;  %v1023_v1 = vld [vmem:[#allocation5 + $0x50] sm:$0xf0]  ;;  %v1415_v2 = vld [vmem:[#allocation5 + $0x144] sm:$0xf]  ;;  %v1022_v4 = vor.u32 %v1385_v60, %v1021_v59 }
  0x24   :  { %499 = vmatpush.bf16.msra.mxu1 %v1182_v45  ;;  %v1151_v3 = vld [vmem:[#allocation5 + $0x150] sm:$0xf0]  ;;  %v1150_v5 = vor.u32 %v1417_v63, %v1149_v61  ;;  %v1026_v6 = vor.u32 %v1383_v0, %v1023_v1  ;;  %v1005_v7 = vld [vmem:[#allocation5 + $0x20] sm:$0xf]  ;;  %v1381_v8 = vld [vmem:[#allocation5 + $0x2c] sm:$0xf0] }
  0x25   :  { %512 = vmatpush.bf16.msra.mxu2 %v1058_v46  ;;  %v1133_v9 = vld [vmem:[#allocation5 + $0x120] sm:$0xf]  ;;  %v1154_v10 = vor.u32 %v1415_v2, %v1151_v3  ;;  %v1413_v11 = vld [vmem:[#allocation5 + $0x12c] sm:$0xf0]  ;;  %v1379_v12 = vld [vmem:[#allocation5 + $0x24] sm:$0xf]  ;;  %v1006_v17 = vor.u32 %v1381_v8, %v1005_v7 }
  0x26   :  { %525 = vmatpush.bf16.msra.mxu3 %v1186_v50  ;;  %v1007_v13 = vld [vmem:[#allocation5 + $0x30] sm:$0xf0]  ;;  %v1411_v14 = vld [vmem:[#allocation5 + $0x124] sm:$0xf]  ;;  %v989_v16 = vld [vmem:[#allocation5] sm:$0xf]  ;;  %v1134_v21 = vor.u32 %v1413_v11, %v1133_v9 }
  0x27   :  { %487 = vmatpush.bf16.msra.mxu0 %v1038_v56  ;;  %v1135_v15 = vld [vmem:[#allocation5 + $0x130] sm:$0xf0]  ;;  %v1377_v18 = vld [vmem:[#allocation5 + $0xc] sm:$0xf0]  ;;  %v1117_v19 = vld [vmem:[#allocation5 + $0x100] sm:$0xf]  ;;  %v1010_v22 = vor.u32 %v1379_v12, %v1007_v13 }
  0x28   :  { %500 = vmatpush.bf16.msra.mxu1 %v1166_v57  ;;  %v1409_v20 = vld [vmem:[#allocation5 + $0x10c] sm:$0xf0]  ;;  %v1375_v23 = vld [vmem:[#allocation5 + $0x4] sm:$0xf]  ;;  %v991_v24 = vld [vmem:[#allocation5 + $0x10] sm:$0xf0]  ;;  %v1138_v26 = vor.u32 %v1411_v14, %v1135_v15  ;;  %v990_v32 = vor.u32 %v1377_v18, %v989_v16 }
  0x29   :  { %513 = vmatpush.bf16.msra.mxu2 %v1042_v58  ;;  %v80_v25 = vld [vmem:[#allocation2] sm:$0xf]  ;;  %v1407_v27 = vld [vmem:[#allocation5 + $0x104] sm:$0xf]  ;;  %v1119_v28 = vld [vmem:[#allocation5 + $0x110] sm:$0xf0]  ;;  %v1118_v36 = vor.u32 %v1409_v20, %v1117_v19  ;;  %v994_v37 = vor.u32 %v1375_v23, %v991_v24 }
  0x2a   :  { %526 = vmatpush.bf16.msra.mxu3 %v1170_v62  ;;  %82 = vst [vmem:[#allocation1] ss:$4 sm:$0xff] %v80_v25  ;;  %v1109_v29 = vld [vmem:[#allocation5 + $0xe8] sm:$0xf]  ;;  %v1406_v30 = vld [vmem:[#allocation5 + $0xf4] sm:$0xf0]  ;;  %v1122_v40 = vor.u32 %v1407_v27, %v1119_v28 }
  0x2b   :  { %488 = vmatpush.bf16.msra.mxu0 %v1022_v4  ;;  %v1237_v31 = vld [vmem:[#allocation5 + $0x1e8] sm:$0xf]  ;;  %v1438_v33 = vld [vmem:[#allocation5 + $0x1f4] sm:$0xf0]  ;;  %v1404_v34 = vld [vmem:[#allocation5 + $0xec] sm:$0xf]  ;;  %v1110_v41 = vor.u32 %v1406_v30, %v1109_v29 }
  0x2c   :  { %501 = vmatpush.bf16.msra.mxu1 %v1150_v5  ;;  %v1111_v35 = vld [vmem:[#allocation5 + $0xf8] sm:$0xf0]  ;;  %v1436_v38 = vld [vmem:[#allocation5 + $0x1ec] sm:$0xf]  ;;  %v1093_v42 = vld [vmem:[#allocation5 + $0xc8] sm:$0xf]  ;;  %v1238_v44 = vor.u32 %v1438_v33, %v1237_v31 }
  0x2d   :  { %514 = vmatpush.bf16.msra.mxu2 %v1026_v6  ;;  %v1239_v39 = vld [vmem:[#allocation5 + $0x1f8] sm:$0xf0]  ;;  %v1402_v43 = vld [vmem:[#allocation5 + $0xd4] sm:$0xf0]  ;;  %v1114_v45 = vor.u32 %v1404_v34, %v1111_v35  ;;  %v1221_v46 = vld [vmem:[#allocation5 + $0x1c8] sm:$0xf] }
  0x2e   :  { %527 = vmatpush.bf16.msra.mxu3 %v1154_v10  ;;  %v1434_v47 = vld [vmem:[#allocation5 + $0x1d4] sm:$0xf0]  ;;  %v1400_v48 = vld [vmem:[#allocation5 + $0xcc] sm:$0xf]  ;;  %v1242_v49 = vor.u32 %v1436_v38, %v1239_v39  ;;  %v1095_v50 = vld [vmem:[#allocation5 + $0xd8] sm:$0xf0]  ;;  %v1094_v57 = vor.u32 %v1402_v43, %v1093_v42 }
  0x2f   :  { %489 = vmatpush.bf16.msra.mxu0 %v1006_v17  ;;  %v1432_v51 = vld [vmem:[#allocation5 + $0x1cc] sm:$0xf]  ;;  %v1223_v52 = vld [vmem:[#allocation5 + $0x1d8] sm:$0xf0]  ;;  %v1222_v58 = vor.u32 %v1434_v47, %v1221_v46  ;;  %v1098_v59 = vor.u32 %v1400_v48, %v1095_v50  ;;  %v1077_v60 = vld [vmem:[#allocation5 + $0xa8] sm:$0xf] }
  0x30   :  { %502 = vmatpush.bf16.msra.mxu1 %v1134_v21  ;;  %v1398_v61 = vld [vmem:[#allocation5 + $0xb4] sm:$0xf0]  ;;  %v1205_v62 = vld [vmem:[#allocation5 + $0x1a8] sm:$0xf]  ;;  %v1226_v63 = vor.u32 %v1432_v51, %v1223_v52  ;;  %v1396_v1 = vld [vmem:[#allocation5 + $0xac] sm:$0xf] }
  0x31   :  { %515 = vmatpush.bf16.msra.mxu2 %v1010_v22  ;;  %v83_v53 = vld.sshfl [vmem:[#allocation1] sm:$0xff pattern:$0x73625140]  ;;  %v84_v54 = vld.sshfl [vmem:[#allocation1 + $0x8] sm:$0xff pattern:$0x73625140]  ;;  %v1078_v5 = vor.u32 %v1398_v61, %v1077_v60 }
  0x32   :  { %528 = vmatpush.bf16.msra.mxu3 %v1138_v26  ;;  %v1676_v55 = vpack.c.bf16 %v83_v53, %v83_v53  ;;  %v1678_v56 = vpack.c.bf16 %v84_v54, %v84_v54  ;;  %v1430_v0 = vld [vmem:[#allocation5 + $0x1b4] sm:$0xf0]  ;;  %v1079_v2 = vld [vmem:[#allocation5 + $0xb8] sm:$0xf0]  ;;  %v1428_v3 = vld [vmem:[#allocation5 + $0x1ac] sm:$0xf] }
  0x33   :  { %490 = vmatpush.bf16.msra.mxu0 %v990_v32  ;;  %v1207_v4 = vld [vmem:[#allocation5 + $0x1b8] sm:$0xf0]  ;;  %v1206_v6 = vor.u32 %v1430_v0, %v1205_v62  ;;  %v1082_v7 = vor.u32 %v1396_v1, %v1079_v2  ;;  %v1061_v8 = vld [vmem:[#allocation5 + $0x88] sm:$0xf]  ;;  %v1394_v9 = vld [vmem:[#allocation5 + $0x94] sm:$0xf0] }
  0x34   :  { %503 = vmatpush.bf16.msra.mxu1 %v1118_v36  ;;  %v1189_v10 = vld [vmem:[#allocation5 + $0x188] sm:$0xf]  ;;  %v1210_v11 = vor.u32 %v1428_v3, %v1207_v4  ;;  %v1426_v12 = vld [vmem:[#allocation5 + $0x194] sm:$0xf0]  ;;  %v1392_v13 = vld [vmem:[#allocation5 + $0x8c] sm:$0xf]  ;;  %v1062_v17 = vor.u32 %v1394_v9, %v1061_v8 }
  0x35   :  { %516 = vmatpush.bf16.msra.mxu2 %v994_v37  ;;  %v1063_v14 = vld [vmem:[#allocation5 + $0x98] sm:$0xf0]  ;;  %v1424_v15 = vld [vmem:[#allocation5 + $0x18c] sm:$0xf]  ;;  %v1190_v18 = vor.u32 %v1426_v12, %v1189_v10  ;;  %v1045_v20 = vld [vmem:[#allocation5 + $0x68] sm:$0xf] }
  0x36   :  { %529 = vmatpush.bf16.msra.mxu3 %v1122_v40  ;;  %491 = vmatmul.bf16.vlgmr.msra.gmra.mxu0 %v1676_v55  ;;  %v1191_v16 = vld [vmem:[#allocation5 + $0x198] sm:$0xf0]  ;;  %v1066_v19 = vor.u32 %v1392_v13, %v1063_v14  ;;  %v1390_v21 = vld [vmem:[#allocation5 + $0x74] sm:$0xf0]  ;;  %v1173_v22 = vld [vmem:[#allocation5 + $0x168] sm:$0xf] }
  0x37   :  { %535 = vmatpush.bf16.msrb.mxu0 %v1110_v41  ;;  %504 = vmatmul.bf16.vlgmr.msra.gmra.mxu1 %v1678_v56  ;;  %v1194_v23 = vor.u32 %v1424_v15, %v1191_v16  ;;  %v1422_v24 = vld [vmem:[#allocation5 + $0x174] sm:$0xf0]  ;;  %v1388_v25 = vld [vmem:[#allocation5 + $0x6c] sm:$0xf]  ;;  %v1047_v26 = vld [vmem:[#allocation5 + $0x78] sm:$0xf0]  ;;  %v1046_v29 = vor.u32 %v1390_v21, %v1045_v20 }
  0x38   :  { %548 = vmatpush.bf16.msrb.mxu1 %v1238_v44  ;;  %517 = vmatmul.bf16.vlgmr.msra.gmra.mxu2 %v1676_v55  ;;  %v1420_v27 = vld [vmem:[#allocation5 + $0x16c] sm:$0xf]  ;;  %v1175_v28 = vld [vmem:[#allocation5 + $0x178] sm:$0xf0]  ;;  %v1174_v30 = vor.u32 %v1422_v24, %v1173_v22  ;;  %v1050_v31 = vor.u32 %v1388_v25, %v1047_v26  ;;  %v1029_v32 = vld [vmem:[#allocation5 + $0x48] sm:$0xf] }
  0x39   :  { %561 = vmatpush.bf16.msrb.mxu2 %v1114_v45  ;;  %530 = vmatmul.bf16.vlgmr.msra.gmra.mxu3 %v1678_v56  ;;  %v1386_v33 = vld [vmem:[#allocation5 + $0x54] sm:$0xf0]  ;;  %v1157_v34 = vld [vmem:[#allocation5 + $0x148] sm:$0xf]  ;;  %v1178_v35 = vor.u32 %v1420_v27, %v1175_v28  ;;  %v1384_v37 = vld [vmem:[#allocation5 + $0x4c] sm:$0xf] }
  0x3a   :  { %574 = vmatpush.bf16.msrb.mxu3 %v1242_v49  ;;  %v1418_v36 = vld [vmem:[#allocation5 + $0x154] sm:$0xf0]  ;;  %v1031_v38 = vld [vmem:[#allocation5 + $0x58] sm:$0xf0]  ;;  %v1416_v39 = vld [vmem:[#allocation5 + $0x14c] sm:$0xf]  ;;  %v1030_v41 = vor.u32 %v1386_v33, %v1029_v32 }
  0x3b   :  { %536 = vmatpush.bf16.msrb.mxu0 %v1094_v57  ;;  %v1159_v40 = vld [vmem:[#allocation5 + $0x158] sm:$0xf0]  ;;  %v1158_v42 = vor.u32 %v1418_v36, %v1157_v34  ;;  %v1034_v43 = vor.u32 %v1384_v37, %v1031_v38  ;;  %v1013_v44 = vld [vmem:[#allocation5 + $0x28] sm:$0xf]  ;;  %v1382_v45 = vld [vmem:[#allocation5 + $0x34] sm:$0xf0] }
  0x3c   :  { %549 = vmatpush.bf16.msrb.mxu1 %v1222_v58  ;;  %v1141_v46 = vld [vmem:[#allocation5 + $0x128] sm:$0xf]  ;;  %v1162_v47 = vor.u32 %v1416_v39, %v1159_v40  ;;  %v1414_v48 = vld [vmem:[#allocation5 + $0x134] sm:$0xf0]  ;;  %v1380_v49 = vld [vmem:[#allocation5 + $0x2c] sm:$0xf]  ;;  %v1014_v53 = vor.u32 %v1382_v45, %v1013_v44 }
  0x3d   :  { %562 = vmatpush.bf16.msrb.mxu2 %v1098_v59  ;;  %v1015_v50 = vld [vmem:[#allocation5 + $0x38] sm:$0xf0]  ;;  %v1412_v51 = vld [vmem:[#allocation5 + $0x12c] sm:$0xf]  ;;  %v1142_v54 = vor.u32 %v1414_v48, %v1141_v46  ;;  %v997_v58 = vld [vmem:[#allocation5 + $0x8] sm:$0xf] }
  0x3e   :  { %575 = vmatpush.bf16.msrb.mxu3 %v1226_v63  ;;  %v1143_v52 = vld [vmem:[#allocation5 + $0x138] sm:$0xf0]  ;;  %v1018_v57 = vor.u32 %v1380_v49, %v1015_v50  ;;  %v1378_v59 = vld [vmem:[#allocation5 + $0x14] sm:$0xf0]  ;;  %v1125_v60 = vld [vmem:[#allocation5 + $0x108] sm:$0xf] }
  0x3f   :  { %537 = vmatpush.bf16.msrb.mxu0 %v1078_v5  ;;  %v1146_v61 = vor.u32 %v1412_v51, %v1143_v52  ;;  %v1410_v62 = vld [vmem:[#allocation5 + $0x114] sm:$0xf0]  ;;  %v1376_v63 = vld [vmem:[#allocation5 + $0xc] sm:$0xf]  ;;  %v999_v0 = vld [vmem:[#allocation5 + $0x18] sm:$0xf0]  ;;  %v998_v3 = vor.u32 %v1378_v59, %v997_v58 }
  0x40   :  { %550 = vmatpush.bf16.msrb.mxu1 %v1206_v6  ;;  %v1408_v1 = vld [vmem:[#allocation5 + $0x10c] sm:$0xf]  ;;  %v1127_v2 = vld [vmem:[#allocation5 + $0x118] sm:$0xf0]  ;;  %v1126_v4 = vor.u32 %v1410_v62, %v1125_v60  ;;  %v1002_v5 = vor.u32 %v1376_v63, %v999_v0  ;;  %v1445_v8 = vld [vmem:[#allocation8 + $0x30] sm:$0xff]  ;;  %s1633_s15 = smov [#allocation10]  }
  0x41   :  { %563 = vmatpush.bf16.msrb.mxu2 %v1082_v7  ;;  %v1130_v6 = vor.u32 %v1408_v1, %v1127_v2  ;;  %v1446_v7 = vld [vmem:[#allocation8 + $0x38] sm:$0xff]  ;;  %v1444_v10 = vld [vmem:[#allocation8 + $0x28] sm:$0xff]  ;;  %v1443_v12 = vld [vmem:[#allocation8 + $0x20] sm:$0xff]  ;;  %s973_s16 = sshll.u32 %s1633_s15, 4  ;;  %s975_s19 = sshll.u32 %s1713_s5, 4  ;;  %s974_s16 = int_to_ptr.vmem [resolvable:$true] %s973_s16  ;;  %s976_s19 = int_to_ptr.hbm [resolvable:$true] %s975_s19 }
  0x42   :  { %576 = vmatpush.bf16.msrb.mxu3 %v1210_v11  ;;  %v1454_v9 = vld [vmem:[#allocation8 + $0x78] sm:$0xff]  ;;  %v1453_v11 = vld [vmem:[#allocation8 + $0x70] sm:$0xff]  ;;  %v1452_v13 = vld [vmem:[#allocation8 + $0x68] sm:$0xff] }
  0x43   :  { %538 = vmatpush.bf16.msrb.mxu0 %v1062_v17  ;;  %v1442_v14 = vld [vmem:[#allocation8 + $0x18] sm:$0xff]  ;;  %v1451_v15 = vld [vmem:[#allocation8 + $0x60] sm:$0xff]  ;;  %v1448_v26 = vld [vmem:[#allocation8 + $0x48] sm:$0xff] }
  0x44   :  { %551 = vmatpush.bf16.msrb.mxu1 %v1190_v18  ;;  %v1450_v16 = vld [vmem:[#allocation8 + $0x58] sm:$0xff]  ;;  %v1440_v18 = vld [vmem:[#allocation8 + $0x8] sm:$0xff]  ;;  %v1447_v32 = vld [vmem:[#allocation8 + $0x40] sm:$0xff] }
  0x45   :  { %564 = vmatpush.bf16.msrb.mxu2 %v1066_v19  ;;  %v1449_v19 = vld [vmem:[#allocation8 + $0x50] sm:$0xff]  ;;  %v1462_v24 = vld [vmem:[#allocation8 + $0xb8] sm:$0xff]  ;;  %v1460_v40 = vld [vmem:[#allocation8 + $0xa8] sm:$0xff] }
  0x46   :  { %577 = vmatpush.bf16.msrb.mxu3 %v1194_v23  ;;  %v1439_v23 = vld [vmem:[#allocation8] sm:$0xff]  ;;  %v1470_v36 = vld [vmem:[#allocation8 + $0xf8] sm:$0xff]  ;;  %v1468_v48 = vld [vmem:[#allocation8 + $0xe8] sm:$0xff] }
  0x47   :  { %539 = vmatpush.bf16.msrb.mxu0 %v1046_v29  ;;  %v1461_v29 = vld [vmem:[#allocation8 + $0xb0] sm:$0xff]  ;;  %v1459_v44 = vld [vmem:[#allocation8 + $0xa0] sm:$0xff]  ;;  %v1458_v52 = vld [vmem:[#allocation8 + $0x98] sm:$0xff] }
  0x48   :  { %552 = vmatpush.bf16.msrb.mxu1 %v1174_v30  ;;  %v1457_v58 = vld [vmem:[#allocation8 + $0x90] sm:$0xff]  ;;  %v1466_v60 = vld [vmem:[#allocation8 + $0xd8] sm:$0xff]  ;;  %v1456_v2 = vld [vmem:[#allocation8 + $0x88] sm:$0xff] }
  0x49   :  { %565 = vmatpush.bf16.msrb.mxu2 %v1050_v31 }
  0x4a   :  { %578 = vmatpush.bf16.msrb.mxu3 %v1178_v35 }
  0x4b   :  { %540 = vmatpush.bf16.msrb.mxu0 %v1030_v41 }
  0x4c   :  { %553 = vmatpush.bf16.msrb.mxu1 %v1158_v42  ;;  %v1469_v42 = vld [vmem:[#allocation8 + $0xf0] sm:$0xff] }
  0x4d   :  { %566 = vmatpush.bf16.msrb.mxu2 %v1034_v43 }
  0x4e   :  { %579 = vmatpush.bf16.msrb.mxu3 %v1162_v47 }
  0x4f   :  { %541 = vmatpush.bf16.msrb.mxu0 %v1014_v53  ;;  %v1467_v53 = vld [vmem:[#allocation8 + $0xe0] sm:$0xff] }
  0x50   :  { %554 = vmatpush.bf16.msrb.mxu1 %v1142_v54 }
  0x51   :  { %567 = vmatpush.bf16.msrb.mxu2 %v1018_v57 }
  0x52   :  { %580 = vmatpush.bf16.msrb.mxu3 %v1146_v61 }
  0x53   :  { %542 = vmatpush.bf16.msrb.mxu0 %v998_v3 }
  0x54   :  { %555 = vmatpush.bf16.msrb.mxu1 %v1126_v4 }
  0x55   :  { %568 = vmatpush.bf16.msrb.mxu2 %v1002_v5 }
  0x56   :  { %581 = vmatpush.bf16.msrb.mxu3 %v1130_v6  ;;  %543 = vmatmul.bf16.vlgmr.msrb.gmra.mxu0 %v1676_v55  ;;  %v1465_v6 = vld [vmem:[#allocation8 + $0xd0] sm:$0xff] }
  0x57   :  { %556 = vmatmul.bf16.vlgmr.msrb.gmra.mxu1 %v1678_v56  ;;  %915 = vmatpush.bf16.msra.mxu0 %v1446_v7 }
  0x58   :  { %569 = vmatmul.bf16.vlgmr.msrb.gmra.mxu2 %v1676_v55  ;;  %928 = vmatpush.bf16.msra.mxu1 %v1454_v9  ;;  %v1441_v55 = vld [vmem:[#allocation8 + $0x10] sm:$0xff] }
  0x59   :  { %582 = vmatmul.bf16.vlgmr.msrb.gmra.mxu3 %v1678_v56  ;;  %v1688_v56 = vld [vmem:[#allocation7] sm:$0xf]  ;;  %941 = vmatpush.bf16.msra.mxu2 %v1462_v24 }
  0x5a   :  { %v155_v17 = vperm.slane %v1688_v56, 0  ;;  %v156_v27 = vperm.slane %v1688_v56, 1  ;;  %954 = vmatpush.bf16.msra.mxu3 %v1470_v36  ;;  %v157_v1 = vperm.slane %v1688_v56, 2 }
  0x5b   :  { %916 = vmatpush.bf16.msra.mxu0 %v1445_v8 }
  0x5c   :  { %929 = vmatpush.bf16.msra.mxu1 %v1453_v11 }
  0x5d   :  { %942 = vmatpush.bf16.msra.mxu2 %v1461_v29 }
  0x5e   :  { %955 = vmatpush.bf16.msra.mxu3 %v1469_v42 }
  0x5f   :  { %917 = vmatpush.bf16.msra.mxu0 %v1444_v10 }
  0x60   :  { %930 = vmatpush.bf16.msra.mxu1 %v1452_v13  ;;  %v1455_v13 = vld [vmem:[#allocation8 + $0x80] sm:$0xff] }
  0x61   :  { %943 = vmatpush.bf16.msra.mxu2 %v1460_v40 }
  0x62   :  { %956 = vmatpush.bf16.msra.mxu3 %v1468_v48 }
  0x63   :  { %918 = vmatpush.bf16.msra.mxu0 %v1443_v12 }
  0x64   :  { %931 = vmatpush.bf16.msra.mxu1 %v1451_v15 }
  0x65   :  { %944 = vmatpush.bf16.msra.mxu2 %v1459_v44 }
  0x66   :  { %957 = vmatpush.bf16.msra.mxu3 %v1467_v53 }
  0x67   :  { %919 = vmatpush.bf16.msra.mxu0 %v1442_v14 }
  0x68   :  { %932 = vmatpush.bf16.msra.mxu1 %v1450_v16  ;;  %v1464_v16 = vld [vmem:[#allocation8 + $0xc8] sm:$0xff] }
  0x69   :  { %945 = vmatpush.bf16.msra.mxu2 %v1458_v52 }
  0x6a   :  { %958 = vmatpush.bf16.msra.mxu3 %v1466_v60 }
  0x6b   :  { %920 = vmatpush.bf16.msra.mxu0 %v1441_v55 }
  0x6c   :  { %933 = vmatpush.bf16.msra.mxu1 %v1449_v19 }
  0x6d   :  { %946 = vmatpush.bf16.msra.mxu2 %v1457_v58 }
  0x6e   :  { %959 = vmatpush.bf16.msra.mxu3 %v1465_v6 }
  0x6f   :  { %921 = vmatpush.bf16.msra.mxu0 %v1440_v18  ;;  %v158_v18 = vperm.slane %v1688_v56, 3 }
  0x70   :  { %934 = vmatpush.bf16.msra.mxu1 %v1448_v26  ;;  %v1463_v26 = vld [vmem:[#allocation8 + $0xc0] sm:$0xff] }
  0x71   :  { %947 = vmatpush.bf16.msra.mxu2 %v1456_v2 }
  0x72   :  { %960 = vmatpush.bf16.msra.mxu3 %v1464_v16 }
  0x73   :  { %922 = vmatpush.bf16.msra.mxu0 %v1439_v23 }
  0x74   :  { %935 = vmatpush.bf16.msra.mxu1 %v1447_v32 }
  0x75   :  { %948 = vmatpush.bf16.msra.mxu2 %v1455_v13 }
  0x76   :  { %961 = vmatpush.bf16.msra.mxu3 %v1463_v26 }
  0xb3   :  { %v492_v20 = vpop.f32.mrf.mxu0 }
  0xb4   :  { %v493_v21 = vadd.f32 %v492_v20, %v155_v17  ;;  %v505_v22 = vpop.f32.mrf.mxu1 }
  0xb6   :  { %v1691_v25 = vadd.f32 %v505_v22, %v493_v21 }
  0xb8   :  { %v591_v28 = vand.u32 2147483647, %v1691_v25  ;;  %v587_v4 = vmax.f32 %v1691_v25, 0.0 }
  0xba   :  { %v595_v30 = vsub.f32 0.0, %v591_v28 }
  0xbb   :  { %v518_v31 = vpop.f32.mrf.mxu2  ;;  %v494_v35 = vpop.f32.mrf.mxu0 }
  0xbc   :  { %v519_v33 = vadd.f32 %v518_v31, %v156_v27  ;;  %v531_v34 = vpop.f32.mrf.mxu3  ;;  %v599_v37 = vmul.f32 1.442695, %v595_v30  ;;  %v507_v38 = vpop.f32.mrf.mxu1 }
  0xbe   :  { %v1695_v39 = vadd.f32 %v531_v34, %v519_v33  ;;  %1481 = vpow2.f32 %v599_v37 }
  0xc0   :  { %v592_v41 = vand.u32 2147483647, %v1695_v39  ;;  %v588_v22 = vmax.f32 %v1695_v39, 0.0 }
  0xc2   :  { %v596_v43 = vsub.f32 0.0, %v592_v41 }
  0xc3   :  { %v520_v45 = vpop.f32.mrf.mxu2 }
  0xc4   :  { %v601_v46 = vmul.f32 1.442695, %v596_v43  ;;  %v533_v47 = vpop.f32.mrf.mxu3  ;;  %v1482_v49 = vpop.eup %1481 }
  0xc5   :  { %v607_v50 = vadd.f32 1.0, %v1482_v49  ;;  %v610_v51 = vmul.f32 -0.5, %v1482_v49  ;;  %v613_v57 = vand.u32 2147483647, %v1482_v49 }
  0xc6   :  { %1483 = vpow2.f32 %v601_v46 }
  0xc7   :  { %1485 = vlog2.f32 %v607_v50  ;;  %v611_v54 = vadd.f32 1.0, %v610_v51  ;;  %vm614_vm0 = vcmp.lt.f32.partialorder %v613_v57, 0.0004427343 }
  0xc9   :  { %v612_v61 = vmul.f32 %v1482_v49, %v611_v54 }
  0xcc   :  { %v1484_v59 = vpop.eup %1483 }
  0xcd   :  { %v616_v62 = vadd.f32 1.0, %v1484_v59  ;;  %v619_v63 = vmul.f32 -0.5, %v1484_v59  ;;  %v1486_v0 = vpop.eup %1485  ;;  %v622_v8 = vand.u32 2147483647, %v1484_v59 }
  0xce   :  { %v609_v3 = vmul.f32 0.6931472, %v1486_v0 }
  0xcf   :  { %1487 = vlog2.f32 %v616_v62  ;;  %v620_v5 = vadd.f32 1.0, %v619_v63  ;;  %vm623_vm1 = vcmp.lt.f32.partialorder %v622_v8, 0.0004427343  ;;  %v1480_v8 = vld [vmem:[%s1712_s4] ss:$0 sm:$0xff] }
  0xd0   :  { %v615_v7 = vsel %vm614_vm0, %v612_v61, %v609_v3 }
  0xd1   :  { %v643_v10 = vadd.f32 %v615_v7, %v587_v4  ;;  %v621_v15 = vmul.f32 %v1484_v59, %v620_v5 }
  0xd3   :  { %v544_v9 = vpop.f32.mrf.mxu0  ;;  %v1243_v14 = vadd.f32 -0.6931472, %v643_v10 }
  0xd4   :  { %v545_v11 = vadd.f32 %v544_v9, %v157_v1  ;;  %v557_v12 = vpop.f32.mrf.mxu1 }
  0xd5   :  { %v1488_v17 = vpop.eup %1487  ;;  %v651_v19 = vpack.c.bf16 %v1243_v14, %v1243_v14 }
  0xd6   :  { %v558_v55 = vadd.f32 %v557_v12, %v545_v11  ;;  %v618_v20 = vmul.f32 0.6931472, %v1488_v17 }
  0xd7   :  { %923 = vmatmul.bf16.vlgmr.msra.gmra.mxu0 %v651_v19 }
  0xd8   :  { %v593_v21 = vand.u32 2147483647, %v558_v55  ;;  %v624_v23 = vsel %vm623_vm1, %v621_v15, %v618_v20  ;;  %v589_v51 = vmax.f32 %v558_v55, 0.0 }
  0xd9   :  { %v644_v27 = vadd.f32 %v624_v23, %v588_v22 }
  0xda   :  { %v597_v24 = vsub.f32 0.0, %v593_v21 }
  0xdb   :  { %v570_v25 = vpop.f32.mrf.mxu2  ;;  %v546_v30 = vpop.f32.mrf.mxu0  ;;  %v1244_v33 = vadd.f32 -0.6931472, %v644_v27 }
  0xdc   :  { %v571_v28 = vadd.f32 %v570_v25, %v158_v18  ;;  %v583_v29 = vpop.f32.mrf.mxu3  ;;  %v603_v31 = vmul.f32 1.442695, %v597_v24  ;;  %v559_v32 = vpop.f32.mrf.mxu1 }
  0xdd   :  { %v652_v34 = vpack.c.bf16 %v1244_v33, %v1244_v33 }
  0xde   :  { %v584_v56 = vadd.f32 %v583_v29, %v571_v28  ;;  %1489 = vpow2.f32 %v603_v31 }
  0xdf   :  { %936 = vmatmul.bf16.vlgmr.msra.gmra.mxu1 %v652_v34 }
  0xe0   :  { %v594_v35 = vand.u32 2147483647, %v584_v56  ;;  %v590_v63 = vmax.f32 %v584_v56, 0.0 }
  0xe2   :  { %v598_v36 = vsub.f32 0.0, %v594_v35 }
  0xe3   :  { %v572_v37 = vpop.f32.mrf.mxu2 }
  0xe4   :  { %v605_v38 = vmul.f32 1.442695, %v598_v36  ;;  %v585_v39 = vpop.f32.mrf.mxu3  ;;  %v1490_v40 = vpop.eup %1489 }
  0xe5   :  { %v625_v41 = vadd.f32 1.0, %v1490_v40  ;;  %v628_v42 = vmul.f32 -0.5, %v1490_v40  ;;  %v631_v45 = vand.u32 2147483647, %v1490_v40 }
  0xe6   :  { %1491 = vpow2.f32 %v605_v38 }
  0xe7   :  { %1493 = vlog2.f32 %v625_v41  ;;  %v629_v43 = vadd.f32 1.0, %v628_v42  ;;  %vm632_vm2 = vcmp.lt.f32.partialorder %v631_v45, 0.0004427343 }
  0xe9   :  { %v630_v50 = vmul.f32 %v1490_v40, %v629_v43 }
  0xec   :  { %v1492_v44 = vpop.eup %1491 }
  0xed   :  { %v634_v46 = vadd.f32 1.0, %v1492_v44  ;;  %v1494_v47 = vpop.eup %1493  ;;  %v637_v48 = vmul.f32 -0.5, %v1492_v44  ;;  %v640_v57 = vand.u32 2147483647, %v1492_v44 }
  0xee   :  { %v627_v49 = vmul.f32 0.6931472, %v1494_v47 }
  0xef   :  { %1495 = vlog2.f32 %v634_v46  ;;  %v638_v54 = vadd.f32 1.0, %v637_v48  ;;  %vm641_vm3 = vcmp.lt.f32.partialorder %v640_v57, 0.0004427343 }
  0xf0   :  { %v633_v52 = vsel %vm632_vm2, %v630_v50, %v627_v49 }
  0xf1   :  { %v645_v53 = vadd.f32 %v633_v52, %v589_v51  ;;  %v639_v62 = vmul.f32 %v1492_v44, %v638_v54 }
  0xf3   :  { %v1245_v58 = vadd.f32 -0.6931472, %v645_v53 }
  0xf5   :  { %v1496_v59 = vpop.eup %1495  ;;  %v653_v60 = vpack.c.bf16 %v1245_v58, %v1245_v58 }
  0xf6   :  { %v636_v61 = vmul.f32 0.6931472, %v1496_v59 }
  0xf7   :  { %949 = vmatmul.bf16.vlgmr.msra.gmra.mxu2 %v653_v60 }
  0xf8   :  { %v642_v0 = vsel %vm641_vm3, %v639_v62, %v636_v61 }
  0xf9   :  { %v646_v1 = vadd.f32 %v642_v0, %v590_v63 }
  0xfb   :  { %v1246_v2 = vadd.f32 -0.6931472, %v646_v1 }
  0xfd   :  { %v654_v3 = vpack.c.bf16 %v1246_v2, %v1246_v2 }
  0xff   :  { %962 = vmatmul.bf16.vlgmr.msra.gmra.mxu3 %v654_v3 }
 0x154   :  { %v924_v4 = vpop.f32.mrf.mxu0 }
 0x155   :  { %v925_v10 = vadd.f32 %v1480_v8, %v924_v4 }
 0x15c   :  { %v937_v5 = vpop.f32.mrf.mxu1  ;;  %v926_v6 = vpop.f32.mrf.mxu0 }
 0x15d   :  { %v938_v11 = vadd.f32 %v937_v5, %v925_v10 }
 0x164   :  { %v939_v7 = vpop.f32.mrf.mxu1 }
 0x17a   :  { %v950_v9 = vpop.f32.mrf.mxu2 }
 0x17b   :  { %v951_v12 = vadd.f32 %v950_v9, %v938_v11 }
 0x182   :  { %v963_v13 = vpop.f32.mrf.mxu3  ;;  %v952_v15 = vpop.f32.mrf.mxu2 }
 0x183   :  { %v964_v14 = vadd.f32 %v963_v13, %v951_v12 }
 0x185   :  { %967 = vst [vmem:[#allocation10] sm:$0x3] %v964_v14 }
 0x186   :  { %978 = dma.vmem_to_hbm [thread:$0]  %s974_s16, 32, %s976_s19, [#allocation4]  }
 0x18a   :  { %v965_v55 = vpop.f32.mrf.mxu3 }
 0x18b   :  { %1623 = dma.done.wait [#allocation4], 32  }
 0x18c   :  { %1624 = vsyncadd [#allocation4], 4294967264 }
 0x18d   :  { %983 = vsyncpa [#allocation3], 1 }
 0x18e   :  { %984 = vsyncpa [#allocation6], 1 }
 0x18f   :  { %985 = vsyncpa [#allocation9], 1 }
 0x190   :  { %986 = vsyncpa [#allocation4], 1 }

</bundles_post_ra>
